<compile_context>
chip_gen: v5e
topology: v5e:2x2
jax: 0.10.0
libtpu: 0.0.40
codegen_flags: <defaults>
</compile_context>

<pallas_src>
import numpy as np
import jax
import jax.numpy as jnp
from jax.experimental import pallas as pl
from jax.experimental.pallas import tpu as pltpu

# ---------------- module config ----------------
NUM_LAYERS = 4
LAYERS_WITH_COORDS = (0, 2)
HIDDEN = 32
LAT_DIM = 4
SPATIAL_DIM = 3          # encoding=None -> raw xyz coords
ACTIVATION = "sine"
DROPOUT_P = 0.0          # TODO(synk): train-mode dropout not implemented (identity at eval / p=0)
OUT_DIM = 3


def _round_up(x, m):
    return ((x + m - 1) // m) * m


def _cdiv(a, b):
    return (a + b - 1) // b


def _in_channels():
    in_ch = [HIDDEN] * NUM_LAYERS
    for l in LAYERS_WITH_COORDS:
        in_ch[l] = HIDDEN + SPATIAL_DIM
    in_ch[0] = SPATIAL_DIM + LAT_DIM
    return in_ch


# ---------------- bounded-range sine (replaces generic jnp.sin lowering) ----------------
def _fit_sin_poly(num_coeffs=6):
    """LSQ fit sin(r) ~= sum_j c_j * r^(2j+1) on r in [-pi, pi] (Chebyshev nodes)."""
    n = 2048
    u = (1.0 - np.cos(np.linspace(0.0, np.pi, n + 1)[1:])) / 2.0      # (0, 1]
    r = np.pi * u
    A = np.stack([u ** (2 * j + 1) for j in range(num_coeffs)], axis=1)
    cu, *_ = np.linalg.lstsq(A, np.sin(r), rcond=None)
    coefs = [float(cu[j] / np.pi ** (2 * j + 1)) for j in range(num_coeffs)]
    # sanity: max abs error on [-pi, pi] must be tiny (expected ~1e-7)
    rr = np.linspace(-np.pi, np.pi, 10001)
    approx = sum(c * rr ** (2 * j + 1) for j, c in enumerate(coefs))
    assert float(np.max(np.abs(approx - np.sin(rr)))) < 1e-4
    return coefs


_TWO_PI = float(2.0 * np.pi)
_INV_TWO_PI = float(1.0 / (2.0 * np.pi))
_SIN_COEFS = _fit_sin_poly(6)


def _sin_approx(y):
    # One-fma-style mod-2pi reduction (args here are bounded, |y| <~ few hundred)
    # + degree-11 odd polynomial. ~2-3x fewer VALU ops than the generic lowering.
    k = jnp.floor(y * _INV_TWO_PI + 0.5)
    r = y - k * _TWO_PI                     # r in [-pi, pi]
    r2 = r * r
    p = _SIN_COEFS[-1]
    for c in reversed(_SIN_COEFS[:-1]):
        p = p * r2 + c
    return r * p


def _act(x):
    if ACTIVATION == "sine":
        return _sin_approx(30.0 * x)
    return jnp.maximum(x, 0.0)


# ---------------- Pallas kernel ----------------
def inr_kernel(*refs):
    """refs = (coords_ref, w_cc_ref, <per-layer refs...>, out_ref).

    Channel-major: out_ch on sublanes, in_ch / points on lanes.
      w_cc             : (n_coord_layers*H, S)  stacked coord weights (one matmul)
      layer 0          : b_eff (H, 1)           [latent contribution folded in]
      residual layer   : w_feat (H, H), b (H, 1)
      layer with coords: w_feat (H, H), b (H, 1)  [coord part comes from w_cc]
      last layer       : w (OUT, H), b (OUT, 1)
    """
    coords_ref = refs[0]
    wcc_ref = refs[1]
    out_ref = refs[-1]
    pref = refs[2:-1]

    def mm(w, x):
        # f32 operands on purpose (NOT bf16): SIREN amplifies argument error ~30x.
        return jnp.dot(w, x, preferred_element_type=jnp.float32)

    coords = coords_ref[...]                       # (SPATIAL_DIM, tn)
    cproj = mm(wcc_ref[...], coords)               # (n_coord_layers*H, tn), one K=3 matmul

    feats = None
    idx = 0
    slot = 0
    for i in range(NUM_LAYERS - 1):
        append = i in LAYERS_WITH_COORDS
        if i == 0:
            b_eff = pref[idx][...]
            idx += 1
            if append:
                h = cproj[slot * HIDDEN:(slot + 1) * HIDDEN, :] + b_eff
                slot += 1
            else:  # latent-only first layer (not the baked config)
                h = jnp.broadcast_to(b_eff, (HIDDEN, coords.shape[-1]))
        elif append:
            # torch.cat([features, coords], -1) @ W == split matmuls
            w_f, b = pref[idx][...], pref[idx + 1][...]
            idx += 2
            h = mm(w_f, feats) + cproj[slot * HIDDEN:(slot + 1) * HIDDEN, :] + b
            slot += 1
        else:
            w_f, b = pref[idx][...], pref[idx + 1][...]
            idx += 2
            h = mm(w_f, feats) + b
        out = _act(h)                              # (HIDDEN, tn), lane-dense
        # dropout layers are identity (eval / p == 0)
        feats = out if append else feats + out

    w_last, b_last = pref[idx][...], pref[idx + 1][...]
    out_ref[...] = (mm(w_last, feats) + b_last).astype(out_ref.dtype)


# ---------------- wrapper ----------------
def registration_inr_forward(closest_latents, local_coords, params, tn=8192,
                             coords_channel_major=False, return_channel_major=False):
    if coords_channel_major:
        B, S, N = local_coords.shape
    else:
        B, N, S = local_coords.shape
    assert S == SPATIAL_DIM

    # Pad points only to a multiple of 128; trailing partial block is write-masked.
    N128 = _round_up(N, 128)
    tn = max(128, min(_round_up(tn, 128), N128))
    # Keep >= 2 grid steps so v7x can shard across its 2 TensorCores.
    while B * _cdiv(N128, tn) < 2 and tn > 128:
        tn = max(128, _round_up(tn // 2, 128))
    n_tiles = _cdiv(N128, tn)

    hp = jax.lax.Precision.HIGHEST

    coords = local_coords.astype(jnp.float32)
    if coords_channel_major:
        coords_cm = coords
        if N128 != N:
            coords_cm = jnp.pad(coords_cm, ((0, 0), (0, 0), (0, N128 - N)))
    else:
        if N128 != N:
            coords = jnp.pad(coords, ((0, 0), (0, N128 - N), (0, 0)))
        coords_cm = jnp.transpose(coords, (0, 2, 1))        # (B, SPATIAL_DIM, N128)

    coord_ws = []          # stacked coordinate weights -> one fused K=3 matmul
    layer_inputs = []
    layer_specs = []

    def add_whole(arr):
        zeros = (0,) * arr.ndim
        layer_inputs.append(arr)
        layer_specs.append(pl.BlockSpec(arr.shape, lambda b, j, _z=zeros: _z))

    for i in range(NUM_LAYERS - 1):
        w, bias = params[i]
        append = i in LAYERS_WITH_COORDS
        if i == 0:
            # Fold the per-batch latent part of layer 0 into an effective bias;
            # no (B*N, LAT_DIM) broadcast ever touches HBM.
            if LAT_DIM > 0:
                lat_contrib = jnp.dot(closest_latents.astype(jnp.float32),
                                      w[:LAT_DIM, :], precision=hp)
            else:
                lat_contrib = jnp.zeros((B, HIDDEN), jnp.float32)
            b_eff = (lat_contrib + bias.reshape(1, HIDDEN)).reshape(B, HIDDEN, 1)
            if append:
                coord_ws.append(jnp.transpose(w[LAT_DIM:, :]))   # (HIDDEN, SPATIAL_DIM)
            layer_inputs.append(b_eff)
            layer_specs.append(pl.BlockSpec((None, HIDDEN, 1), lambda b, j: (b, 0, 0)))
        elif append:
            add_whole(jnp.transpose(w[:HIDDEN, :]))              # (HIDDEN, HIDDEN)
            coord_ws.append(jnp.transpose(w[HIDDEN:, :]))        # (HIDDEN, SPATIAL_DIM)
            add_whole(bias.reshape(HIDDEN, 1))
        else:
            add_whole(jnp.transpose(w))                          # (HIDDEN, HIDDEN)
            add_whole(bias.reshape(HIDDEN, 1))

    wl, bl = params[-1]
    add_whole(jnp.transpose(wl))                                 # (OUT_DIM, HIDDEN)
    add_whole(bl.reshape(OUT_DIM, 1))

    if coord_ws:
        w_cc = jnp.concatenate(coord_ws, axis=0)                 # (n_coord*H, S)
    else:
        w_cc = jnp.zeros((HIDDEN, SPATIAL_DIM), jnp.float32)

    inputs = [coords_cm, w_cc] + layer_inputs
    in_specs = ([pl.BlockSpec((None, SPATIAL_DIM, tn), lambda b, j: (b, 0, j)),
                 pl.BlockSpec(w_cc.shape, lambda b, j: (0, 0))]
                + layer_specs)

    out_cm = pl.pallas_call(
        inr_kernel,
        out_shape=jax.ShapeDtypeStruct((B, OUT_DIM, N128), jnp.float32),
        grid_spec=pltpu.PrefetchScalarGridSpec(
            num_scalar_prefetch=0,
            grid=(B, n_tiles),
            in_specs=in_specs,
            out_specs=pl.BlockSpec((None, OUT_DIM, tn), lambda b, j: (b, 0, j)),
        ),
        compiler_params=pltpu.CompilerParams(
            dimension_semantics=("parallel", "parallel")),
    )(*inputs)

    if return_channel_major:
        return out_cm[:, :, :N]
    out = jnp.transpose(out_cm, (0, 2, 1))                       # (B, N128, OUT_DIM)
    return out[:, :N, :]


# ---------------- deterministic parameter init (mirrors init_weights) ----------------
def make_params(key):
    in_ch = _in_channels()
    params = []
    for i in range(NUM_LAYERS - 1):
        key, sub = jax.random.split(key)
        fan_in = in_ch[i]
        if ACTIVATION == "sine":
            bound = np.sqrt(1.0 / fan_in) if i == 0 else np.sqrt(6.0 / fan_in) / 30.0
        else:
            bound = np.sqrt(1.0 / fan_in)
        w = jax.random.uniform(sub, (fan_in, HIDDEN), jnp.float32, -bound, bound)
        b = jnp.zeros((1, HIDDEN), jnp.float32)
        params.append((w, b))
    # last_layer: default torch.nn.Linear init
    key, sub_w, sub_b = jax.random.split(key, 3)
    fan_in = in_ch[-1]
    bound = 1.0 / np.sqrt(fan_in)
    wl = jax.random.uniform(sub_w, (fan_in, OUT_DIM), jnp.float32, -bound, bound)
    bl = jax.random.uniform(sub_b, (1, OUT_DIM), jnp.float32, -bound, bound)
    params.append((wl, bl))
    return params


# ---------------- pure-JAX reference (for correctness check) ----------------
def reference_forward(closest_latents, local_coords, params):
    B, N, _ = local_coords.shape
    coords = local_coords.astype(jnp.float32)
    feats = None
    if LAT_DIM > 0:
        feats = jnp.broadcast_to(closest_latents[:, None, :], (B, N, LAT_DIM))
    for i in range(NUM_LAYERS - 1):
        w, b = params[i]
        append = i in LAYERS_WITH_COORDS
        if append:
            feats = coords if feats is None else jnp.concatenate([feats, coords], -1)
        h = jnp.einsum("bnk,kh->bnh", feats, w,
                       precision=jax.lax.Precision.HIGHEST) + b[0]
        out = jnp.sin(30.0 * h) if ACTIVATION == "sine" else jnp.maximum(h, 0.0)
        feats = out if append else feats + out
    wl, bl = params[-1]
    return jnp.einsum("bnk,kh->bnh", feats, wl,
                      precision=jax.lax.Precision.HIGHEST) + bl[0]


if __name__ == "__main__":
    key = jax.random.PRNGKey(0)
    k_lat, k_coords, k_par = jax.random.split(key, 3)

    params = make_params(k_par)

    # small demo shapes consistent with the module
    B, N = 2, 64
    closest_latents = jax.random.normal(k_lat, (B, LAT_DIM), jnp.float32)
    local_coords = jax.random.uniform(k_coords, (B, N, SPATIAL_DIM),
                                      jnp.float32, -1.0, 1.0)
    out = jax.block_until_ready(
        registration_inr_forward(closest_latents, local_coords, params))
    ref = reference_forward(closest_latents, local_coords, params)
    np.testing.assert_allclose(np.asarray(out), np.asarray(ref),
                               rtol=2e-3, atol=2e-3)

    # second check: exercises 128-padding + trailing PARTIAL block write-masking
    # (N=300 -> N128=384, tn=256 -> grid of 2 tiles, last tile half-valid)
    B2, N2 = 2, 300
    k_lat2, k_coords2 = jax.random.split(jax.random.PRNGKey(1))
    lat2 = jax.random.normal(k_lat2, (B2, LAT_DIM), jnp.float32)
    coords2 = jax.random.uniform(k_coords2, (B2, N2, SPATIAL_DIM),
                                 jnp.float32, -1.0, 1.0)
    out2 = jax.block_until_ready(
        registration_inr_forward(lat2, coords2, params, tn=256))
    ref2 = reference_forward(lat2, coords2, params)
    np.testing.assert_allclose(np.asarray(out2), np.asarray(ref2),
                               rtol=2e-3, atol=2e-3)

    print("KERNEL_OK")
</pallas_src>

<mosaic_0001>
module attributes {stable_mosaic.version = 11 : i64} {
  func.func @inr_kernel(%arg0: i32, %arg1: i32, %arg2: memref<1x3x128xf32, #tpu.memory_space<vmem>>, %arg3: memref<64x3xf32, #tpu.memory_space<vmem>>, %arg4: memref<1x32x1xf32, #tpu.memory_space<vmem>>, %arg5: memref<32x32xf32, #tpu.memory_space<vmem>>, %arg6: memref<32x1xf32, #tpu.memory_space<vmem>>, %arg7: memref<32x32xf32, #tpu.memory_space<vmem>>, %arg8: memref<32x1xf32, #tpu.memory_space<vmem>>, %arg9: memref<3x32xf32, #tpu.memory_space<vmem>>, %arg10: memref<3x1xf32, #tpu.memory_space<vmem>>, %arg11: memref<1x3x128xf32, #tpu.memory_space<vmem>>) attributes {dimension_semantics = [#tpu.dimension_semantics<parallel>, #tpu.dimension_semantics<parallel>], iteration_bounds = array<i64: 2, 1>, scalar_prefetch = 0 : i64, scratch_operands = 0 : i64, tpu.core_type = #tpu.core_type<tc>, window_params = [{transform_indices = @transform_0, window_bounds = array<i64: 1, 3, 128>}, {pipeline_mode = #tpu.pipeline_mode<synchronous>, transform_indices = @transform_1, window_bounds = array<i64: 64, 3>}, {transform_indices = @transform_2, window_bounds = array<i64: 1, 32, 1>}, {pipeline_mode = #tpu.pipeline_mode<synchronous>, transform_indices = @transform_3, window_bounds = array<i64: 32, 32>}, {pipeline_mode = #tpu.pipeline_mode<synchronous>, transform_indices = @transform_4, window_bounds = array<i64: 32, 1>}, {pipeline_mode = #tpu.pipeline_mode<synchronous>, transform_indices = @transform_5, window_bounds = array<i64: 32, 32>}, {pipeline_mode = #tpu.pipeline_mode<synchronous>, transform_indices = @transform_6, window_bounds = array<i64: 32, 1>}, {pipeline_mode = #tpu.pipeline_mode<synchronous>, transform_indices = @transform_7, window_bounds = array<i64: 3, 32>}, {pipeline_mode = #tpu.pipeline_mode<synchronous>, transform_indices = @transform_8, window_bounds = array<i64: 3, 1>}, {transform_indices = @transform_9, window_bounds = array<i64: 1, 3, 128>}]} {
    %c0 = arith.constant 0 : index
    %c0_0 = arith.constant 0 : index
    %c0_1 = arith.constant 0 : index
    %0 = vector.load %arg2[%c0, %c0_0, %c0_1] : memref<1x3x128xf32, #tpu.memory_space<vmem>>, vector<1x3x128xf32>
    %1 = vector.shape_cast %0 : vector<1x3x128xf32> to vector<3x128xf32>
    %c0_2 = arith.constant 0 : index
    %c0_3 = arith.constant 0 : index
    %2 = vector.load %arg3[%c0_2, %c0_3] : memref<64x3xf32, #tpu.memory_space<vmem>>, vector<64x3xf32>
    %cst = arith.constant dense<0.000000e+00> : vector<64x128xf32>
    %3 = tpu.matmul %2, %1, %cst {dimension_numbers = #tpu.dot_dimension_numbers<[1], [0], [0], [1], [0, 0, 1, 1], [], []>} : vector<64x3xf32>, vector<3x128xf32>, vector<64x128xf32> -> vector<64x128xf32>
    %c0_4 = arith.constant 0 : index
    %c0_5 = arith.constant 0 : index
    %c0_6 = arith.constant 0 : index
    %4 = vector.load %arg4[%c0_4, %c0_5, %c0_6] : memref<1x32x1xf32, #tpu.memory_space<vmem>>, vector<1x32x1xf32>
    %5 = vector.shape_cast %4 : vector<1x32x1xf32> to vector<32x1xf32>
    %6 = vector.extract_strided_slice %3 {offsets = [0, 0], sizes = [32, 128], strides = [1, 1]} : vector<64x128xf32> to vector<32x128xf32>
    %7 = vector.broadcast %5 : vector<32x1xf32> to vector<32x128xf32>
    %8 = arith.addf %6, %7 : vector<32x128xf32>
    %cst_7 = arith.constant 3.000000e+01 : f32
    %9 = vector.broadcast %cst_7 : f32 to vector<32x128xf32>
    %10 = arith.mulf %9, %8 : vector<32x128xf32>
    %cst_8 = arith.constant 0.159154937 : f32
    %11 = vector.broadcast %cst_8 : f32 to vector<32x128xf32>
    %12 = arith.mulf %10, %11 : vector<32x128xf32>
    %cst_9 = arith.constant 5.000000e-01 : f32
    %13 = vector.broadcast %cst_9 : f32 to vector<32x128xf32>
    %14 = arith.addf %12, %13 : vector<32x128xf32>
    %15 = math.floor %14 : vector<32x128xf32>
    %cst_10 = arith.constant 6.28318548 : f32
    %16 = vector.broadcast %cst_10 : f32 to vector<32x128xf32>
    %17 = arith.mulf %15, %16 : vector<32x128xf32>
    %18 = arith.subf %10, %17 : vector<32x128xf32>
    %19 = arith.mulf %18, %18 : vector<32x128xf32>
    %cst_11 = arith.constant -2.04173602E-8 : f32
    %20 = vector.broadcast %cst_11 : f32 to vector<32x128xf32>
    %21 = arith.mulf %20, %19 : vector<32x128xf32>
    %cst_12 = arith.constant 2.70127293E-6 : f32
    %22 = vector.broadcast %cst_12 : f32 to vector<32x128xf32>
    %23 = arith.addf %21, %22 : vector<32x128xf32>
    %24 = arith.mulf %23, %19 : vector<32x128xf32>
    %cst_13 = arith.constant -1.98102571E-4 : f32
    %25 = vector.broadcast %cst_13 : f32 to vector<32x128xf32>
    %26 = arith.addf %24, %25 : vector<32x128xf32>
    %27 = arith.mulf %26, %19 : vector<32x128xf32>
    %cst_14 = arith.constant 0.00833247881 : f32
    %28 = vector.broadcast %cst_14 : f32 to vector<32x128xf32>
    %29 = arith.addf %27, %28 : vector<32x128xf32>
    %30 = arith.mulf %29, %19 : vector<32x128xf32>
    %cst_15 = arith.constant -0.166665673 : f32
    %31 = vector.broadcast %cst_15 : f32 to vector<32x128xf32>
    %32 = arith.addf %30, %31 : vector<32x128xf32>
    %33 = arith.mulf %32, %19 : vector<32x128xf32>
    %cst_16 = arith.constant 0.999999701 : f32
    %34 = vector.broadcast %cst_16 : f32 to vector<32x128xf32>
    %35 = arith.addf %33, %34 : vector<32x128xf32>
    %36 = arith.mulf %18, %35 : vector<32x128xf32>
    %c0_17 = arith.constant 0 : index
    %c0_18 = arith.constant 0 : index
    %37 = vector.load %arg5[%c0_17, %c0_18] : memref<32x32xf32, #tpu.memory_space<vmem>>, vector<32x32xf32>
    %c0_19 = arith.constant 0 : index
    %c0_20 = arith.constant 0 : index
    %38 = vector.load %arg6[%c0_19, %c0_20] : memref<32x1xf32, #tpu.memory_space<vmem>>, vector<32x1xf32>
    %cst_21 = arith.constant dense<0.000000e+00> : vector<32x128xf32>
    %39 = tpu.matmul %37, %36, %cst_21 {dimension_numbers = #tpu.dot_dimension_numbers<[1], [0], [0], [1], [0, 0, 1, 1], [], []>} : vector<32x32xf32>, vector<32x128xf32>, vector<32x128xf32> -> vector<32x128xf32>
    %40 = vector.broadcast %38 : vector<32x1xf32> to vector<32x128xf32>
    %41 = arith.addf %39, %40 : vector<32x128xf32>
    %cst_22 = arith.constant 3.000000e+01 : f32
    %42 = vector.broadcast %cst_22 : f32 to vector<32x128xf32>
    %43 = arith.mulf %42, %41 : vector<32x128xf32>
    %cst_23 = arith.constant 0.159154937 : f32
    %44 = vector.broadcast %cst_23 : f32 to vector<32x128xf32>
    %45 = arith.mulf %43, %44 : vector<32x128xf32>
    %cst_24 = arith.constant 5.000000e-01 : f32
    %46 = vector.broadcast %cst_24 : f32 to vector<32x128xf32>
    %47 = arith.addf %45, %46 : vector<32x128xf32>
    %48 = math.floor %47 : vector<32x128xf32>
    %cst_25 = arith.constant 6.28318548 : f32
    %49 = vector.broadcast %cst_25 : f32 to vector<32x128xf32>
    %50 = arith.mulf %48, %49 : vector<32x128xf32>
    %51 = arith.subf %43, %50 : vector<32x128xf32>
    %52 = arith.mulf %51, %51 : vector<32x128xf32>
    %cst_26 = arith.constant -2.04173602E-8 : f32
    %53 = vector.broadcast %cst_26 : f32 to vector<32x128xf32>
    %54 = arith.mulf %53, %52 : vector<32x128xf32>
    %cst_27 = arith.constant 2.70127293E-6 : f32
    %55 = vector.broadcast %cst_27 : f32 to vector<32x128xf32>
    %56 = arith.addf %54, %55 : vector<32x128xf32>
    %57 = arith.mulf %56, %52 : vector<32x128xf32>
    %cst_28 = arith.constant -1.98102571E-4 : f32
    %58 = vector.broadcast %cst_28 : f32 to vector<32x128xf32>
    %59 = arith.addf %57, %58 : vector<32x128xf32>
    %60 = arith.mulf %59, %52 : vector<32x128xf32>
    %cst_29 = arith.constant 0.00833247881 : f32
    %61 = vector.broadcast %cst_29 : f32 to vector<32x128xf32>
    %62 = arith.addf %60, %61 : vector<32x128xf32>
    %63 = arith.mulf %62, %52 : vector<32x128xf32>
    %cst_30 = arith.constant -0.166665673 : f32
    %64 = vector.broadcast %cst_30 : f32 to vector<32x128xf32>
    %65 = arith.addf %63, %64 : vector<32x128xf32>
    %66 = arith.mulf %65, %52 : vector<32x128xf32>
    %cst_31 = arith.constant 0.999999701 : f32
    %67 = vector.broadcast %cst_31 : f32 to vector<32x128xf32>
    %68 = arith.addf %66, %67 : vector<32x128xf32>
    %69 = arith.mulf %51, %68 : vector<32x128xf32>
    %70 = arith.addf %36, %69 : vector<32x128xf32>
    %c0_32 = arith.constant 0 : index
    %c0_33 = arith.constant 0 : index
    %71 = vector.load %arg7[%c0_32, %c0_33] : memref<32x32xf32, #tpu.memory_space<vmem>>, vector<32x32xf32>
    %c0_34 = arith.constant 0 : index
    %c0_35 = arith.constant 0 : index
    %72 = vector.load %arg8[%c0_34, %c0_35] : memref<32x1xf32, #tpu.memory_space<vmem>>, vector<32x1xf32>
    %cst_36 = arith.constant dense<0.000000e+00> : vector<32x128xf32>
    %73 = tpu.matmul %71, %70, %cst_36 {dimension_numbers = #tpu.dot_dimension_numbers<[1], [0], [0], [1], [0, 0, 1, 1], [], []>} : vector<32x32xf32>, vector<32x128xf32>, vector<32x128xf32> -> vector<32x128xf32>
    %74 = vector.extract_strided_slice %3 {offsets = [32, 0], sizes = [32, 128], strides = [1, 1]} : vector<64x128xf32> to vector<32x128xf32>
    %75 = arith.addf %73, %74 : vector<32x128xf32>
    %76 = vector.broadcast %72 : vector<32x1xf32> to vector<32x128xf32>
    %77 = arith.addf %75, %76 : vector<32x128xf32>
    %cst_37 = arith.constant 3.000000e+01 : f32
    %78 = vector.broadcast %cst_37 : f32 to vector<32x128xf32>
    %79 = arith.mulf %78, %77 : vector<32x128xf32>
    %cst_38 = arith.constant 0.159154937 : f32
    %80 = vector.broadcast %cst_38 : f32 to vector<32x128xf32>
    %81 = arith.mulf %79, %80 : vector<32x128xf32>
    %cst_39 = arith.constant 5.000000e-01 : f32
    %82 = vector.broadcast %cst_39 : f32 to vector<32x128xf32>
    %83 = arith.addf %81, %82 : vector<32x128xf32>
    %84 = math.floor %83 : vector<32x128xf32>
    %cst_40 = arith.constant 6.28318548 : f32
    %85 = vector.broadcast %cst_40 : f32 to vector<32x128xf32>
    %86 = arith.mulf %84, %85 : vector<32x128xf32>
    %87 = arith.subf %79, %86 : vector<32x128xf32>
    %88 = arith.mulf %87, %87 : vector<32x128xf32>
    %cst_41 = arith.constant -2.04173602E-8 : f32
    %89 = vector.broadcast %cst_41 : f32 to vector<32x128xf32>
    %90 = arith.mulf %89, %88 : vector<32x128xf32>
    %cst_42 = arith.constant 2.70127293E-6 : f32
    %91 = vector.broadcast %cst_42 : f32 to vector<32x128xf32>
    %92 = arith.addf %90, %91 : vector<32x128xf32>
    %93 = arith.mulf %92, %88 : vector<32x128xf32>
    %cst_43 = arith.constant -1.98102571E-4 : f32
    %94 = vector.broadcast %cst_43 : f32 to vector<32x128xf32>
    %95 = arith.addf %93, %94 : vector<32x128xf32>
    %96 = arith.mulf %95, %88 : vector<32x128xf32>
    %cst_44 = arith.constant 0.00833247881 : f32
    %97 = vector.broadcast %cst_44 : f32 to vector<32x128xf32>
    %98 = arith.addf %96, %97 : vector<32x128xf32>
    %99 = arith.mulf %98, %88 : vector<32x128xf32>
    %cst_45 = arith.constant -0.166665673 : f32
    %100 = vector.broadcast %cst_45 : f32 to vector<32x128xf32>
    %101 = arith.addf %99, %100 : vector<32x128xf32>
    %102 = arith.mulf %101, %88 : vector<32x128xf32>
    %cst_46 = arith.constant 0.999999701 : f32
    %103 = vector.broadcast %cst_46 : f32 to vector<32x128xf32>
    %104 = arith.addf %102, %103 : vector<32x128xf32>
    %105 = arith.mulf %87, %104 : vector<32x128xf32>
    %c0_47 = arith.constant 0 : index
    %c0_48 = arith.constant 0 : index
    %106 = vector.load %arg9[%c0_47, %c0_48] : memref<3x32xf32, #tpu.memory_space<vmem>>, vector<3x32xf32>
    %c0_49 = arith.constant 0 : index
    %c0_50 = arith.constant 0 : index
    %107 = vector.load %arg10[%c0_49, %c0_50] : memref<3x1xf32, #tpu.memory_space<vmem>>, vector<3x1xf32>
    %cst_51 = arith.constant dense<0.000000e+00> : vector<3x128xf32>
    %108 = tpu.matmul %106, %105, %cst_51 {dimension_numbers = #tpu.dot_dimension_numbers<[1], [0], [0], [1], [0, 0, 1, 1], [], []>} : vector<3x32xf32>, vector<32x128xf32>, vector<3x128xf32> -> vector<3x128xf32>
    %109 = vector.broadcast %107 : vector<3x1xf32> to vector<3x128xf32>
    %110 = arith.addf %108, %109 : vector<3x128xf32>
    %c0_52 = arith.constant 0 : index
    %c0_53 = arith.constant 0 : index
    %c0_54 = arith.constant 0 : index
    %111 = vector.load %arg11[%c0_52, %c0_53, %c0_54] : memref<1x3x128xf32, #tpu.memory_space<vmem>>, vector<1x3x128xf32>
    %112 = vector.shape_cast %111 : vector<1x3x128xf32> to vector<3x128xf32>
    %113 = vector.shape_cast %110 : vector<3x128xf32> to vector<1x3x128xf32>
    tpu.vector_store %arg11[%c0_52, %c0_53, %c0_54], %113 {strides = array<i32>} : memref<1x3x128xf32, #tpu.memory_space<vmem>>, vector<1x3x128xf32>,
    return
  }
  func.func @transform_0(%arg0: i32, %arg1: i32) -> (i32, i32, i32) {
    %c0_i32 = arith.constant 0 : i32
    %c0_i32_0 = arith.constant 0 : i32
    return %arg0, %c0_i32, %arg1 : i32, i32, i32
  }
  func.func @transform_1(%arg0: i32, %arg1: i32) -> (i32, i32) {
    %c0_i32 = arith.constant 0 : i32
    %c0_i32_0 = arith.constant 0 : i32
    %c0_i32_1 = arith.constant 0 : i32
    return %c0_i32, %c0_i32_0 : i32, i32
  }
  func.func @transform_2(%arg0: i32, %arg1: i32) -> (i32, i32, i32) {
    %c0_i32 = arith.constant 0 : i32
    %c0_i32_0 = arith.constant 0 : i32
    %c0_i32_1 = arith.constant 0 : i32
    return %arg0, %c0_i32, %c0_i32_0 : i32, i32, i32
  }
  func.func @transform_3(%arg0: i32, %arg1: i32) -> (i32, i32) {
    %c0_i32 = arith.constant 0 : i32
    %c0_i32_0 = arith.constant 0 : i32
    %c0_i32_1 = arith.constant 0 : i32
    return %c0_i32, %c0_i32_0 : i32, i32
  }
  func.func @transform_4(%arg0: i32, %arg1: i32) -> (i32, i32) {
    %c0_i32 = arith.constant 0 : i32
    %c0_i32_0 = arith.constant 0 : i32
    %c0_i32_1 = arith.constant 0 : i32
    return %c0_i32, %c0_i32_0 : i32, i32
  }
  func.func @transform_5(%arg0: i32, %arg1: i32) -> (i32, i32) {
    %c0_i32 = arith.constant 0 : i32
    %c0_i32_0 = arith.constant 0 : i32
    %c0_i32_1 = arith.constant 0 : i32
    return %c0_i32, %c0_i32_0 : i32, i32
  }
  func.func @transform_6(%arg0: i32, %arg1: i32) -> (i32, i32) {
    %c0_i32 = arith.constant 0 : i32
    %c0_i32_0 = arith.constant 0 : i32
    %c0_i32_1 = arith.constant 0 : i32
    return %c0_i32, %c0_i32_0 : i32, i32
  }
  func.func @transform_7(%arg0: i32, %arg1: i32) -> (i32, i32) {
    %c0_i32 = arith.constant 0 : i32
    %c0_i32_0 = arith.constant 0 : i32
    %c0_i32_1 = arith.constant 0 : i32
    return %c0_i32, %c0_i32_0 : i32, i32
  }
  func.func @transform_8(%arg0: i32, %arg1: i32) -> (i32, i32) {
    %c0_i32 = arith.constant 0 : i32
    %c0_i32_0 = arith.constant 0 : i32
    %c0_i32_1 = arith.constant 0 : i32
    return %c0_i32, %c0_i32_0 : i32, i32
  }
  func.func @transform_9(%arg0: i32, %arg1: i32) -> (i32, i32, i32) {
    %c0_i32 = arith.constant 0 : i32
    %c0_i32_0 = arith.constant 0 : i32
    return %arg0, %c0_i32, %arg1 : i32, i32, i32
  }
}

</mosaic_0001>

<bundles_post_ra>
// kernel: tpu_custom_call.1
= control target key start
LH: loop header
LB: loop body
LE: loop exit
PB: predicated region body
PF: predicated region fallthrough
CT: control target
= control target key end

     0   :  { %s1100_s30 = smov 0   ;;  %s1102_s10 = smov 0   ;;  %s1280_s0 = inlined_call_operand.vmem [shape: f32[2,3,128], index: 0, kind: input, shape index: {}]   ;;  %s1281_s1 = inlined_call_operand.vmem [shape: f32[64,3], index: 1, kind: input, shape index: {}]   ;;  %s1282_s2 = inlined_call_operand.vmem [shape: f32[2,32,1], index: 2, kind: input, shape index: {}]   ;;  %s1283_s3 = inlined_call_operand.vmem [shape: f32[32,32], index: 3, kind: input, shape index: {}]   ;;  %s1284_s4 = inlined_call_operand.vmem [shape: f32[32,1], index: 4, kind: input, shape index: {}]   ;;  %s1285_s5 = inlined_call_operand.vmem [shape: f32[32,32], index: 5, kind: input, shape index: {}]   ;;  %s1286_s6 = inlined_call_operand.vmem [shape: f32[32,1], index: 6, kind: input, shape index: {}]   ;;  %s1287_s7 = inlined_call_operand.vmem [shape: f32[3,32], index: 7, kind: input, shape index: {}]   ;;  %s1288_s8 = inlined_call_operand.vmem [shape: f32[3,1], index: 8, kind: input, shape index: {}]   ;;  %s1289_s9 = inlined_call_operand.vmem [shape: f32[2,3,128], index: 9, kind: output, shape index: {}]  }
   0x1   :  { %s1104_s11 = smov 0  }
   0x2 LB: > { %s31_s12 = sadd.s32 1, %s1043_s10  ;;  %p970_p0 = scmp.ge.s32.totalorder %s1047_s11, 1  ;;  %s1047_s11 = sphi %s1104_s11, %s19_s11   ;;  %s1043_s10 = sphi %s1102_s10, %s1291_s10   ;;  %s1039_s30 = sphi %s1100_s30, %s1290_s30  }
   0x3   : > { %p33_p1 = scmp.ge.s32.totalorder %s31_s12, 2  ;;  %p315_p2 = scmp.lt.s32.totalorder %s1047_s11, 3 }
   0x5   : > { %s1293_s12 = smov (%p33_p1, %s31_s12), 0  ;;  %p316_p3 = pnand %p970_p0, %p315_p2 }
   0x6   : > { %p360_p4 = scmp.lt.s32.totalorder (!%p316_p3), %s1039_s30, 1 }
   0x7   : > { %319 = sbr.rel (%p316_p3) target bundleno = 747 (0x2eb), region = 56 }
   0xc   : > { %v1049_v0 = vmov 0   ;;  %s1295_s30 = smov (!%p360_p4, %s1039_s30), 1  ;;  %vm413_vm0 = vcmask 1042432   ;;  %v380_v1 = vld [vmem:[%s1281_s1] sm:$0xff]  ;;  %vm388_vm1 = vcmask 23552   ;;  %v381_v6 = vld [vmem:[%s1281_s1 + $0x8] sm:$0xff] }
   0xd   : > { %1022 = vset.pattern.permute.xlu0 %v1049_v0  ;;  %1023 = vset.pattern.permute.xlu1 %v1049_v0  ;;  %s995_s13 = sshll.u32 %s1295_s30, 5  ;;  %s971_s14 = sshll.u32 %s1295_s30, 2  ;;  %v563_v8 = vld [vmem:[%s1284_s4 + $0x8] sm:$0xff]  ;;  %v382_v9 = vld [vmem:[%s1281_s1 + $0x10] sm:$0xff]  ;;  %v562_v10 = vld [vmem:[%s1284_s4] sm:$0xff]  ;;  %vm586_vm2 = vcmask 261120  }
   0xe   : > { %1024 = vset.pattern.permute.xlu2 %v1049_v0  ;;  %s371_s17 = scalar_lea.vmem %s1282_s2, %s995_s13  ;;  %s366_s20 = scalar_lea.vmem %s1280_s0, %s971_s14  ;;  %v710_v11 = vld [vmem:[%s1286_s6 + $0x10] sm:$0xff]  ;;  %v383_v12 = vld [vmem:[%s1281_s1 + $0x18] sm:$0xff]  ;;  %v709_v13 = vld [vmem:[%s1286_s6 + $0x8] sm:$0xff] }
   0xf   : > { %v461_v2 = vld [vmem:[%s371_s17 + $0x18] sm:$0xff]  ;;  %v379_v3 = vld [vmem:[%s366_s20] sm:$0x7]  ;;  %v459_v4 = vld [vmem:[%s371_s17 + $0x8] sm:$0xff]  ;;  %s378_s27 = scalar_lea.vmem %s1289_s9, %s971_s14 }
  0x10   : > { %479 = vperm.xlu0 %1022, %v461_v2   ;;  %975 = vmatpush.msk.msra.mxu0 %vm413_vm0, %v379_v3  ;;  %v460_v5 = vld [vmem:[%s371_s17 + $0x10] sm:$0xff]  ;;  %v458_v7 = vld [vmem:[%s371_s17] sm:$0xff] }
  0x11   : > { %976 = vmatmul.msk.f32.vlgmr.msra.gmra.mxu0 %vm388_vm1, %v380_v1  ;;  %469 = vperm.xlu1 %1023, %v459_v4   ;;  %v850_v14 = vld [vmem:[%s1288_s8] sm:$0x7] }
  0x12   : > { %996 = vmatpush.msk.msra.mxu3 %vm413_vm0, %v379_v3 }
  0x18   : > { %474 = vperm.xlu0 %1022, %v460_v5  }
  0x19   : > { %977 = vmatmul.msk.f32.gmra.mxu0 %vm388_vm1, %v381_v6  ;;  %464 = vperm.xlu1 %1023, %v458_v7  }
  0x20   : > { %573 = vperm.xlu0 %1022, %v563_v8  }
  0x21   : > { %978 = vmatmul.msk.f32.gmra.mxu0 %vm388_vm1, %v382_v9  ;;  %568 = vperm.xlu1 %1023, %v562_v10  }
  0x28   : > { %765 = vperm.xlu0 %1022, %v710_v11  }
  0x29   : > { %979 = vmatmul.msk.f32.gmra.mxu0 %vm388_vm1, %v383_v12  ;;  %760 = vperm.xlu1 %1023, %v709_v13  }
  0x30   : > { %853 = vperm.xlu0 %1022, %v850_v14  }
  0x82   : > { %v480_v21 = vpop.permute.xlu0 %479 }
  0x83   : > { %v470_v15 = vpop.permute.xlu1 %469 }
  0x8a   : > { %v475_v30 = vpop.permute.xlu0 %474 }
  0x8b   : > { %v465_v16 = vpop.permute.xlu1 %464 }
  0x8e   : > { %v434_v17 = vpop.f32.mrf.mxu0 }
  0x8f   : > { %v482_v18 = vadd.f32 %v465_v16, %v434_v17 }
  0x91   : > { %v486_v19 = vmul.f32 30.0, %v482_v18 }
  0x93   : > { %v490_v20 = vmul.f32 0.15915494, %v486_v19 }
  0x95   : > { %v494_v22 = vadd.f32 0.5, %v490_v20 }
  0x96   : > { %v437_v23 = vpop.f32.mrf.mxu0 }
  0x97   : > { %v483_v24 = vadd.f32 %v470_v15, %v437_v23  ;;  %v498_v25 = vfloor.f32 %v494_v22 }
  0x99   : > { %v487_v26 = vmul.f32 30.0, %v483_v24  ;;  %v502_v28 = vmul.f32 6.2831855, %v498_v25 }
  0x9b   : > { %v491_v27 = vmul.f32 0.15915494, %v487_v26  ;;  %v1161_v34 = vsub.f32 %v486_v19, %v502_v28 }
  0x9d   : > { %v495_v29 = vadd.f32 0.5, %v491_v27  ;;  %v510_v39 = vmul.f32 %v1161_v34, %v1161_v34 }
  0x9e   : > { %v440_v31 = vpop.f32.mrf.mxu0 }
  0x9f   : > { %v499_v32 = vfloor.f32 %v495_v29  ;;  %v484_v33 = vadd.f32 %v475_v30, %v440_v31  ;;  %v514_v48 = vmul.f32 -2.041736e-08, %v510_v39  ;;  %v565_v31 = vld [vmem:[%s1284_s4 + $0x18] sm:$0xff] }
  0xa0   : > { %583 = vperm.xlu2 %1024, %v565_v31  }
  0xa1   : > { %v503_v35 = vmul.f32 6.2831855, %v499_v32  ;;  %v488_v36 = vmul.f32 30.0, %v484_v33  ;;  %v518_v54 = vadd.f32 2.701273e-06, %v514_v48 }
  0xa3   : > { %v1163_v37 = vsub.f32 %v487_v26, %v503_v35  ;;  %v492_v38 = vmul.f32 0.15915494, %v488_v36  ;;  %v522_v60 = vmul.f32 %v518_v54, %v510_v39 }
  0xa5   : > { %v511_v40 = vmul.f32 %v1163_v37, %v1163_v37  ;;  %v496_v41 = vadd.f32 0.5, %v492_v38  ;;  %v526_v2 = vadd.f32 -0.00019810257, %v522_v60  ;;  %v558_v38 = vld [vmem:[%s1283_s3] sm:$0xff] }
  0xa6   : > { %v443_v42 = vpop.f32.mrf.mxu0 }
  0xa7   : > { %v500_v43 = vfloor.f32 %v496_v41  ;;  %v485_v44 = vadd.f32 %v480_v21, %v443_v42  ;;  %v515_v45 = vmul.f32 -2.041736e-08, %v511_v40  ;;  %v530_v8 = vmul.f32 %v526_v2, %v510_v39  ;;  %v708_v41 = vld [vmem:[%s1286_s6] sm:$0xff]  ;;  %v561_v42 = vld [vmem:[%s1283_s3 + $0x18] sm:$0xff] }
  0xa9   : > { %v504_v46 = vmul.f32 6.2831855, %v500_v43  ;;  %v489_v47 = vmul.f32 30.0, %v485_v44  ;;  %v519_v51 = vadd.f32 2.701273e-06, %v515_v45  ;;  %v569_v43 = vpop.permute.xlu1 %568 }
  0xaa   : > { %v534_v13 = vadd.f32 0.008332479, %v530_v8 }
  0xab   : > { %v508_v49 = vsub.f32 %v488_v36, %v504_v46  ;;  %v493_v50 = vmul.f32 0.15915494, %v489_v47  ;;  %v523_v57 = vmul.f32 %v519_v51, %v511_v40 }
  0xac   : > { %v538_v18 = vmul.f32 %v534_v13, %v510_v39 }
  0xad   : > { %v512_v52 = vmul.f32 %v508_v49, %v508_v49  ;;  %v497_v53 = vadd.f32 0.5, %v493_v50  ;;  %v527_v63 = vadd.f32 -0.00019810257, %v523_v57  ;;  %v574_v50 = vpop.permute.xlu0 %573 }
  0xae   : > { %v542_v23 = vadd.f32 -0.16666567, %v538_v18 }
  0xaf   : > { %v501_v55 = vfloor.f32 %v497_v53  ;;  %v516_v56 = vmul.f32 -2.041736e-08, %v512_v52  ;;  %v531_v5 = vmul.f32 %v527_v63, %v511_v40 }
  0xb0   : > { %v546_v28 = vmul.f32 %v542_v23, %v510_v39  ;;  %v564_v39 = vld [vmem:[%s1284_s4 + $0x10] sm:$0xff] }
  0xb1   : > { %v505_v58 = vmul.f32 6.2831855, %v501_v55  ;;  %v520_v59 = vadd.f32 2.701273e-06, %v516_v56  ;;  %v535_v10 = vadd.f32 0.008332479, %v531_v5  ;;  %578 = vperm.xlu2 %1024, %v564_v39  }
  0xb2   : > { %v550_v33 = vadd.f32 0.9999997, %v546_v28  ;;  %v385_v39 = vld [vmem:[%s1281_s1 + $0x28] sm:$0xff] }
  0xb3   : > { %v509_v61 = vsub.f32 %v489_v47, %v505_v58  ;;  %v524_v62 = vmul.f32 %v520_v59, %v512_v52  ;;  %v539_v15 = vmul.f32 %v535_v10, %v511_v40  ;;  %981 = vmatmul.msk.f32.vlgmr.msra.gmra.mxu3 %vm388_vm1, %v385_v39 }
  0xb4   : > { %v1183_v36 = vmul.f32 %v550_v33, %v1161_v34  ;;  %v711_v34 = vld [vmem:[%s1286_s6 + $0x18] sm:$0xff] }
  0xb5   : > { %v513_v0 = vmul.f32 %v509_v61, %v509_v61  ;;  %v528_v1 = vadd.f32 -0.00019810257, %v524_v62  ;;  %v543_v20 = vadd.f32 -0.16666567, %v539_v15  ;;  %v766_v39 = vpop.permute.xlu0 %765 }
  0xb7   : > { %v517_v3 = vmul.f32 -2.041736e-08, %v513_v0  ;;  %v532_v4 = vmul.f32 %v528_v1, %v512_v52  ;;  %v547_v25 = vmul.f32 %v543_v20, %v511_v40  ;;  %v560_v40 = vld [vmem:[%s1283_s3 + $0x10] sm:$0xff] }
  0xb9   : > { %v521_v6 = vadd.f32 2.701273e-06, %v517_v3  ;;  %v536_v7 = vadd.f32 0.008332479, %v532_v4  ;;  %v551_v30 = vadd.f32 0.9999997, %v547_v25  ;;  %770 = vperm.xlu2 %1024, %v711_v34  }
  0xbb   : > { %v525_v9 = vmul.f32 %v521_v6, %v513_v0  ;;  %v540_v12 = vmul.f32 %v536_v7, %v512_v52  ;;  %v1179_v35 = vmul.f32 %v551_v30, %v1163_v37  ;;  %v559_v37 = vld [vmem:[%s1283_s3 + $0x8] sm:$0xff] }
  0xbd   : > { %v529_v11 = vadd.f32 -0.00019810257, %v525_v9  ;;  %v544_v17 = vadd.f32 -0.16666567, %v540_v12 }
  0xbf   : > { %v533_v14 = vmul.f32 %v529_v11, %v513_v0  ;;  %v548_v22 = vmul.f32 %v544_v17, %v512_v52 }
  0xc1   : > { %v537_v16 = vadd.f32 0.008332479, %v533_v14  ;;  %v552_v27 = vadd.f32 0.9999997, %v548_v22  ;;  %755 = vperm.xlu2 %1024, %v708_v41  }
  0xc3   : > { %v541_v19 = vmul.f32 %v537_v16, %v513_v0  ;;  %v1175_v32 = vmul.f32 %v552_v27, %v508_v49 }
  0xc5   : > { %v545_v21 = vadd.f32 -0.16666567, %v541_v19 }
  0xc7   : > { %v549_v24 = vmul.f32 %v545_v21, %v513_v0 }
  0xc9   : > { %v553_v26 = vadd.f32 0.9999997, %v549_v24 }
  0xcb   : > { %v1169_v29 = vmul.f32 %v553_v26, %v509_v61 }
  0xcd   : > { %611 = vmatpush.msra.mxu1 %v1169_v29 }
  0xcf   : > { %612 = vmatpush.msra.mxu1 %v1175_v32 }
  0xd1   : > { %613 = vmatpush.msra.mxu1 %v1179_v35 }
  0xd3   : > { %614 = vmatpush.msra.mxu1 %v1183_v36 }
  0xd4   : > { %984 = vmatmul.msk.f32.vlgmr.msra.gmra.mxu1 %vm586_vm2, %v558_v38  ;;  %v384_v38 = vld [vmem:[%s1281_s1 + $0x20] sm:$0xff] }
  0xd5   : > { %980 = vmatmul.msk.f32.gmra.mxu0 %vm388_vm1, %v384_v38 }
  0xdc   : > { %985 = vmatmul.msk.f32.gmra.mxu1 %vm586_vm2, %v559_v37 }
  0xe4   : > { %986 = vmatmul.msk.f32.gmra.mxu1 %vm586_vm2, %v560_v40 }
  0xec   : > { %987 = vmatmul.msk.f32.gmra.mxu1 %vm586_vm2, %v561_v42 }
  0xfa   : > { %v584_v48 = vpop.permute.xlu2 %583 }
 0x10b   : > { %v579_v58 = vpop.permute.xlu2 %578 }
 0x151   : > { %v616_v44 = vpop.f32.mrf.mxu1 }
 0x152   : > { %v617_v45 = vadd.f32 %v616_v44, %v569_v43 }
 0x154   : > { %v628_v46 = vmul.f32 30.0, %v617_v45 }
 0x156   : > { %v632_v47 = vmul.f32 0.15915494, %v628_v46 }
 0x158   : > { %v636_v49 = vadd.f32 0.5, %v632_v47 }
 0x159   : > { %v619_v51 = vpop.f32.mrf.mxu1 }
 0x15a   : > { %v640_v52 = vfloor.f32 %v636_v49  ;;  %v620_v53 = vadd.f32 %v619_v51, %v574_v50  ;;  %v386_v49 = vld [vmem:[%s1281_s1 + $0x30] sm:$0xff] }
 0x15b   : > { %982 = vmatmul.msk.f32.gmra.mxu3 %vm388_vm1, %v386_v49 }
 0x15c   : > { %v629_v54 = vmul.f32 30.0, %v620_v53  ;;  %v644_v55 = vmul.f32 6.2831855, %v640_v52 }
 0x15e   : > { %v633_v56 = vmul.f32 0.15915494, %v629_v54  ;;  %v1211_v60 = vsub.f32 %v628_v46, %v644_v55 }
 0x160   : > { %v637_v57 = vadd.f32 0.5, %v633_v56  ;;  %v652_v1 = vmul.f32 %v1211_v60, %v1211_v60 }
 0x161   : > { %v622_v59 = vpop.f32.mrf.mxu1 }
 0x162   : > { %v641_v61 = vfloor.f32 %v637_v57  ;;  %v623_v62 = vadd.f32 %v622_v59, %v579_v58  ;;  %v656_v10 = vmul.f32 -2.041736e-08, %v652_v1 }
 0x164   : > { %v645_v63 = vmul.f32 6.2831855, %v641_v61  ;;  %v630_v0 = vmul.f32 30.0, %v623_v62  ;;  %v660_v16 = vadd.f32 2.701273e-06, %v656_v10  ;;  %v387_v61 = vld [vmem:[%s1281_s1 + $0x38] sm:$0xff] }
 0x165   : > { %983 = vmatmul.msk.f32.gmra.mxu3 %vm388_vm1, %v387_v61 }
 0x166   : > { %v1215_v2 = vsub.f32 %v629_v54, %v645_v63  ;;  %v634_v3 = vmul.f32 0.15915494, %v630_v0  ;;  %v664_v22 = vmul.f32 %v660_v16, %v652_v1  ;;  %v449_v16 = vpop.f32.mrf.mxu3 }
 0x168   : > { %v653_v4 = vmul.f32 %v1215_v2, %v1215_v2  ;;  %v638_v5 = vadd.f32 0.5, %v634_v3  ;;  %v668_v28 = vadd.f32 -0.00019810257, %v664_v22 }
 0x169   : > { %v625_v6 = vpop.f32.mrf.mxu1 }
 0x16a   : > { %v642_v7 = vfloor.f32 %v638_v5  ;;  %v626_v8 = vadd.f32 %v625_v6, %v584_v48  ;;  %v657_v9 = vmul.f32 -2.041736e-08, %v653_v4  ;;  %v672_v40 = vmul.f32 %v668_v28, %v652_v1 }
 0x16c   : > { %v646_v11 = vmul.f32 6.2831855, %v642_v7  ;;  %v631_v12 = vmul.f32 30.0, %v626_v8  ;;  %v661_v13 = vadd.f32 2.701273e-06, %v657_v9 }
 0x16d   : > { %v676_v46 = vadd.f32 0.008332479, %v672_v40 }
 0x16e   : > { %v650_v14 = vsub.f32 %v630_v0, %v646_v11  ;;  %v635_v15 = vmul.f32 0.15915494, %v631_v12  ;;  %v665_v19 = vmul.f32 %v661_v13, %v653_v4  ;;  %v704_v13 = vld [vmem:[%s1285_s5] sm:$0xff] }
 0x16f   : > { %v680_v52 = vmul.f32 %v676_v46, %v652_v1 }
 0x170   : > { %v654_v17 = vmul.f32 %v650_v14, %v650_v14  ;;  %v639_v18 = vadd.f32 0.5, %v635_v15  ;;  %v669_v25 = vadd.f32 -0.00019810257, %v665_v19 }
 0x171   : > { %v684_v57 = vadd.f32 -0.16666567, %v680_v52 }
 0x172   : > { %v643_v20 = vfloor.f32 %v639_v18  ;;  %v658_v21 = vmul.f32 -2.041736e-08, %v654_v17  ;;  %v673_v33 = vmul.f32 %v669_v25, %v653_v4 }
 0x173   : > { %v688_v0 = vmul.f32 %v684_v57, %v652_v1 }
 0x174   : > { %v647_v23 = vmul.f32 6.2831855, %v643_v20  ;;  %v662_v24 = vadd.f32 2.701273e-06, %v658_v21  ;;  %v677_v43 = vadd.f32 0.008332479, %v673_v33 }
 0x175   : > { %v692_v8 = vadd.f32 0.9999997, %v688_v0 }
 0x176   : > { %v651_v26 = vsub.f32 %v631_v12, %v647_v23  ;;  %v666_v27 = vmul.f32 %v662_v24, %v654_v17  ;;  %v681_v48 = vmul.f32 %v677_v43, %v653_v4  ;;  %v761_v23 = vpop.permute.xlu1 %760 }
 0x177   : > { %v696_v11 = vmul.f32 %v692_v8, %v1211_v60  ;;  %v446_v60 = vpop.f32.mrf.mxu0 }
 0x178   : > { %v655_v30 = vmul.f32 %v651_v26, %v651_v26  ;;  %v670_v31 = vadd.f32 -0.00019810257, %v666_v27  ;;  %v685_v54 = vadd.f32 -0.16666567, %v681_v48 }
 0x179   : > { %v700_v1 = vadd.f32 %v696_v11, %v1183_v36  ;;  %v771_v36 = vpop.permute.xlu2 %770 }
 0x17a   : > { %v659_v37 = vmul.f32 -2.041736e-08, %v655_v30  ;;  %v674_v34 = vmul.f32 %v670_v31, %v654_v17  ;;  %v689_v59 = vmul.f32 %v685_v54, %v653_v4 }
 0x17c   : > { %v663_v41 = vadd.f32 2.701273e-06, %v659_v37  ;;  %v678_v42 = vadd.f32 0.008332479, %v674_v34  ;;  %v693_v5 = vadd.f32 0.9999997, %v689_v59 }
 0x17e   : > { %v667_v44 = vmul.f32 %v663_v41, %v655_v30  ;;  %v682_v45 = vmul.f32 %v678_v42, %v654_v17  ;;  %v697_v10 = vmul.f32 %v693_v5, %v1215_v2 }
 0x180   : > { %v671_v47 = vadd.f32 -0.00019810257, %v667_v44  ;;  %v686_v51 = vadd.f32 -0.16666567, %v682_v45  ;;  %v701_v12 = vadd.f32 %v697_v10, %v1179_v35  ;;  %v707_v35 = vld [vmem:[%s1285_s5 + $0x18] sm:$0xff] }
 0x181   : > { %v756_v15 = vpop.permute.xlu2 %755 }
 0x182   : > { %v675_v50 = vmul.f32 %v671_v47, %v655_v30  ;;  %v690_v56 = vmul.f32 %v686_v51, %v654_v17 }
 0x184   : > { %v679_v53 = vadd.f32 0.008332479, %v675_v50  ;;  %v694_v63 = vadd.f32 0.9999997, %v690_v56 }
 0x186   : > { %v683_v55 = vmul.f32 %v679_v53, %v655_v30  ;;  %v698_v7 = vmul.f32 %v694_v63, %v650_v14 }
 0x188   : > { %v687_v58 = vadd.f32 -0.16666567, %v683_v55  ;;  %v702_v4 = vadd.f32 %v698_v7, %v1175_v32  ;;  %v706_v32 = vld [vmem:[%s1285_s5 + $0x10] sm:$0xff] }
 0x18a   : > { %v691_v62 = vmul.f32 %v687_v58, %v655_v30 }
 0x18c   : > { %v695_v3 = vadd.f32 0.9999997, %v691_v62 }
 0x18e   : > { %v699_v6 = vmul.f32 %v695_v3, %v651_v26 }
 0x190   : > { %v703_v9 = vadd.f32 %v699_v6, %v1169_v29  ;;  %v705_v29 = vld [vmem:[%s1285_s5 + $0x8] sm:$0xff] }
 0x192   : > { %736 = vmatpush.msra.mxu2 %v703_v9 }
 0x194   : > { %737 = vmatpush.msra.mxu2 %v702_v4 }
 0x196   : > { %738 = vmatpush.msra.mxu2 %v701_v12 }
 0x198   : > { %739 = vmatpush.msra.mxu2 %v700_v1 }
 0x199   : > { %988 = vmatmul.msk.f32.vlgmr.msra.gmra.mxu2 %vm586_vm2, %v704_v13 }
 0x1a1   : > { %989 = vmatmul.msk.f32.gmra.mxu2 %vm586_vm2, %v705_v29 }
 0x1a9   : > { %990 = vmatmul.msk.f32.gmra.mxu2 %vm586_vm2, %v706_v32 }
 0x1b1   : > { %991 = vmatmul.msk.f32.gmra.mxu2 %vm586_vm2, %v707_v35 }
 0x1de   : > { %v452_v25 = vpop.f32.mrf.mxu3 }
 0x1e8   : > { %v455_v43 = vpop.f32.mrf.mxu3 }
 0x21c   : > { %v741_v2 = vpop.f32.mrf.mxu2 }
 0x21d   : > { %v742_v14 = vadd.f32 %v741_v2, %v446_v60 }
 0x21f   : > { %v773_v17 = vadd.f32 %v756_v15, %v742_v14 }
 0x221   : > { %v777_v18 = vmul.f32 30.0, %v773_v17 }
 0x223   : > { %v781_v19 = vmul.f32 0.15915494, %v777_v18 }
 0x224   : > { %v744_v20 = vpop.f32.mrf.mxu2 }
 0x225   : > { %v785_v21 = vadd.f32 0.5, %v781_v19  ;;  %v745_v22 = vadd.f32 %v744_v20, %v449_v16 }
 0x227   : > { %v774_v24 = vadd.f32 %v761_v23, %v745_v22  ;;  %v789_v27 = vfloor.f32 %v785_v21 }
 0x229   : > { %v778_v26 = vmul.f32 30.0, %v774_v24  ;;  %v793_v38 = vmul.f32 6.2831855, %v789_v27 }
 0x22b   : > { %v782_v28 = vmul.f32 0.15915494, %v778_v26  ;;  %v1257_v42 = vsub.f32 %v777_v18, %v793_v38 }
 0x22c   : > { %v747_v30 = vpop.f32.mrf.mxu2 }
 0x22d   : > { %v786_v31 = vadd.f32 0.5, %v782_v28  ;;  %v748_v33 = vadd.f32 %v747_v30, %v452_v25  ;;  %v801_v50 = vmul.f32 %v1257_v42, %v1257_v42 }
 0x22f   : > { %v775_v37 = vadd.f32 %v766_v39, %v748_v33  ;;  %v790_v34 = vfloor.f32 %v786_v31  ;;  %v805_v56 = vmul.f32 -2.041736e-08, %v801_v50 }
 0x231   : > { %v779_v40 = vmul.f32 30.0, %v775_v37  ;;  %v794_v41 = vmul.f32 6.2831855, %v790_v34  ;;  %v809_v63 = vadd.f32 2.701273e-06, %v805_v56 }
 0x233   : > { %v783_v44 = vmul.f32 0.15915494, %v779_v40  ;;  %v798_v45 = vsub.f32 %v778_v26, %v794_v41  ;;  %v813_v8 = vmul.f32 %v809_v63, %v801_v50 }
 0x234   : > { %v750_v46 = vpop.f32.mrf.mxu2 }
 0x235   : > { %v787_v47 = vadd.f32 0.5, %v783_v44  ;;  %v751_v48 = vadd.f32 %v750_v46, %v455_v43  ;;  %v802_v49 = vmul.f32 %v798_v45, %v798_v45  ;;  %v817_v1 = vadd.f32 -0.00019810257, %v813_v8  ;;  %v849_v44 = vld [vmem:[%s1287_s7] sm:$0x7]  ;;  %v854_v46 = vpop.permute.xlu0 %853 }
 0x237   : > { %v776_v51 = vadd.f32 %v771_v36, %v751_v48  ;;  %v791_v52 = vfloor.f32 %v787_v47  ;;  %v806_v53 = vmul.f32 -2.041736e-08, %v802_v49  ;;  %v821_v60 = vmul.f32 %v817_v1, %v801_v50 }
 0x239   : > { %v780_v54 = vmul.f32 30.0, %v776_v51  ;;  %v795_v55 = vmul.f32 6.2831855, %v791_v52  ;;  %v810_v59 = vadd.f32 2.701273e-06, %v806_v53 }
 0x23a   : > { %v825_v17 = vadd.f32 0.008332479, %v821_v60 }
 0x23b   : > { %v784_v57 = vmul.f32 0.15915494, %v780_v54  ;;  %v799_v58 = vsub.f32 %v779_v40, %v795_v55  ;;  %v814_v5 = vmul.f32 %v810_v59, %v802_v49 }
 0x23c   : > { %v829_v22 = vmul.f32 %v825_v17, %v801_v50 }
 0x23d   : > { %v788_v61 = vadd.f32 0.5, %v784_v57  ;;  %v803_v62 = vmul.f32 %v799_v58, %v799_v58  ;;  %v818_v4 = vadd.f32 -0.00019810257, %v814_v5 }
 0x23e   : > { %v833_v27 = vadd.f32 -0.16666567, %v829_v22 }
 0x23f   : > { %v792_v0 = vfloor.f32 %v788_v61  ;;  %v807_v3 = vmul.f32 -2.041736e-08, %v803_v62  ;;  %v822_v32 = vmul.f32 %v818_v4, %v802_v49 }
 0x240   : > { %v837_v38 = vmul.f32 %v833_v27, %v801_v50 }
 0x241   : > { %v796_v6 = vmul.f32 6.2831855, %v792_v0  ;;  %v811_v7 = vadd.f32 2.701273e-06, %v807_v3  ;;  %v826_v14 = vadd.f32 0.008332479, %v822_v32 }
 0x242   : > { %v841_v40 = vadd.f32 0.9999997, %v837_v38 }
 0x243   : > { %v800_v9 = vsub.f32 %v780_v54, %v796_v6  ;;  %v815_v10 = vmul.f32 %v811_v7, %v803_v62  ;;  %v830_v19 = vmul.f32 %v826_v14, %v802_v49 }
 0x244   : > { %v845_v43 = vmul.f32 %v841_v40, %v1257_v42 }
 0x245   : > { %v804_v11 = vmul.f32 %v800_v9, %v800_v9  ;;  %v819_v12 = vadd.f32 -0.00019810257, %v815_v10  ;;  %v834_v24 = vadd.f32 -0.16666567, %v830_v19 }
 0x247   : > { %v808_v13 = vmul.f32 -2.041736e-08, %v804_v11  ;;  %v823_v29 = vmul.f32 %v819_v12, %v803_v62  ;;  %v838_v30 = vmul.f32 %v834_v24, %v802_v49 }
 0x249   : > { %v812_v35 = vadd.f32 2.701273e-06, %v808_v13  ;;  %v827_v36 = vadd.f32 0.008332479, %v823_v29  ;;  %v842_v37 = vadd.f32 0.9999997, %v838_v30 }
 0x24b   : > { %v816_v2 = vmul.f32 %v812_v35, %v804_v11  ;;  %v831_v16 = vmul.f32 %v827_v36, %v803_v62  ;;  %v846_v41 = vmul.f32 %v842_v37, %v798_v45 }
 0x24d   : > { %v820_v15 = vadd.f32 -0.00019810257, %v816_v2  ;;  %v835_v21 = vadd.f32 -0.16666567, %v831_v16 }
 0x24f   : > { %v824_v18 = vmul.f32 %v820_v15, %v804_v11  ;;  %v839_v26 = vmul.f32 %v835_v21, %v803_v62 }
 0x251   : > { %v828_v20 = vadd.f32 0.008332479, %v824_v18  ;;  %v843_v33 = vadd.f32 0.9999997, %v839_v26 }
 0x253   : > { %v832_v23 = vmul.f32 %v828_v20, %v804_v11  ;;  %v847_v34 = vmul.f32 %v843_v33, %v799_v58 }
 0x255   : > { %v836_v25 = vadd.f32 -0.16666567, %v832_v23 }
 0x257   : > { %v840_v28 = vmul.f32 %v836_v25, %v804_v11 }
 0x259   : > { %v844_v31 = vadd.f32 0.9999997, %v840_v28 }
 0x25b   : > { %v848_v39 = vmul.f32 %v844_v31, %v800_v9 }
 0x25d   : > { %871 = vmatpush.msrb.mxu3 %v848_v39 }
 0x25f   : > { %872 = vmatpush.msrb.mxu3 %v847_v34 }
 0x261   : > { %873 = vmatpush.msrb.mxu3 %v846_v41 }
 0x263   : > { %874 = vmatpush.msrb.mxu3 %v845_v43 }
 0x264   : > { %992 = vmatmul.msk.f32.vlgmr.msrb.gmra.mxu3 %vm586_vm2, %v849_v44 }
 0x2e7   : > { %v876_v47 = vpop.f32.mrf.mxu3 }
 0x2e8   : > { %v877_v48 = vadd.f32 %v876_v47, %v854_v46 }
 0x2ea   : > { %879 = vst [vmem:[%s378_s27] sm:$0x7] %v877_v48 }
 0x2eb PF: > { %s19_s11 = sadd.s32 1, %s1047_s11   ;;  %s1290_s30 = smov %s1043_s10 }
 0x2ec   : > { %p16_p5 = scmp.ge.s32.totalorder %s19_s11, 4   ;;  %s1291_s10 = smov %s1293_s12 }
 0x2ee   :  { %18 = sbr.rel (!%p16_p5) target bundleno = 2 (0x2), region = 89 }

</bundles_post_ra>
